<compile_context>
chip_gen: v5e
topology: v5e:2x2
jax: 0.10.0
libtpu: 0.0.40
codegen_flags: <defaults>
</compile_context>

<pallas_src>
import functools
import math

import jax
import jax.numpy as jnp
from jax import lax
from jax.experimental import pallas as pl
from jax.experimental.pallas import tpu as pltpu

# Small sizes consistent with the module's use in cartpole_oldBC.py
T = 8      # sequence length
B = 2      # batch
IN = 4     # input_size (cartpole observation)
HID = 16   # hidden_size
OUT = 8    # output_size


def _sigmoid(x):
    # logistic(x) == 0.5 * tanh(x/2) + 0.5 : single EUP tanh, no divide,
    # numerically stable for large |x|.
    return 0.5 * jnp.tanh(0.5 * x) + 0.5


# ------------------------------- Pallas kernel ------------------------------
def _encoder_kernel(xs_ref,
                    wih_r_ref, wih_z_ref, wih_n_ref,
                    whh_r_ref, whh_z_ref, whh_n_ref,
                    b_r_ref, b_z_ref, bi_n_ref, bh_n_ref,
                    lw_ref, lb_ref,
                    out_ref, *, n_steps, rows_per_step):
    """Fused GRU(input, hidden) + Linear(hidden, output) over a sequence.

    xs : (T*R, IN)  time-major sequence, batch padded to R = 8-sublane rows
    wih_*: (IN, H)  whh_*: (H, H)   biases: (1, H)   (PyTorch gate order r,z,n)
    lw : (H, C)     lb : (1, C)
    out: (T*R, C)
    """
    xs = xs_ref[...]

    # (1) Input projections for ALL timesteps, per gate, hoisted off the
    #     serial h-dependency chain.  b_ih+b_hh are pre-folded for r/z; b_hn
    #     must stay inside r*(W_hn h + b_hn), so only b_in is folded for n.
    gi_r = jnp.dot(xs, wih_r_ref[...], preferred_element_type=jnp.float32) + b_r_ref[...]
    gi_z = jnp.dot(xs, wih_z_ref[...], preferred_element_type=jnp.float32) + b_z_ref[...]
    gi_n = jnp.dot(xs, wih_n_ref[...], preferred_element_type=jnp.float32) + bi_n_ref[...]

    whh_r = whh_r_ref[...]
    whh_z = whh_z_ref[...]
    whh_n = whh_n_ref[...]
    bh_n = bh_n_ref[...]

    h_dim = whh_r.shape[0]
    h = jnp.zeros((rows_per_step, h_dim), jnp.float32)
    hs = []

    # (2) Sequential GRU recurrence, fully unrolled (static trip count, static
    #     slice offsets, every row offset a multiple of 8 -> vreg-aligned).
    for t in range(n_steps):
        lo = t * rows_per_step
        gh_r = jnp.dot(h, whh_r, preferred_element_type=jnp.float32)
        gh_z = jnp.dot(h, whh_z, preferred_element_type=jnp.float32)
        gh_n = jnp.dot(h, whh_n, preferred_element_type=jnp.float32) + bh_n
        r = _sigmoid(gi_r[lo:lo + rows_per_step, :] + gh_r)
        z = _sigmoid(gi_z[lo:lo + rows_per_step, :] + gh_z)
        n = jnp.tanh(gi_n[lo:lo + rows_per_step, :] + r * gh_n)
        h = n + z * (h - n)                      # == (1 - z) * n + z * h
        hs.append(h)

    # (3) Output Linear for ALL timesteps at once + a single store of the
    #     whole (T*R, C) result (no per-step stores, no VMEM round-trips).
    hs_all = jnp.concatenate(hs, axis=0)         # (T*R, H), vreg-aligned stack
    out_ref[...] = (jnp.dot(hs_all, lw_ref[...], preferred_element_type=jnp.float32)
                    + lb_ref[...])


# ----------------------- one-time parameter preparation ---------------------
def prepare_params(params):
    """PyTorch-layout params -> kernel layout (done ONCE, outside the jit)."""
    hid = params['gru_whh'].shape[1]
    wih, whh = params['gru_wih'], params['gru_whh']
    bih, bhh = params['gru_bih'], params['gru_bhh']

    def gate(a, i):
        return a[i * hid:(i + 1) * hid]

    f32 = lambda a: jnp.asarray(a, jnp.float32)
    return {
        'wih_r': f32(gate(wih, 0).T), 'wih_z': f32(gate(wih, 1).T), 'wih_n': f32(gate(wih, 2).T),
        'whh_r': f32(gate(whh, 0).T), 'whh_z': f32(gate(whh, 1).T), 'whh_n': f32(gate(whh, 2).T),
        'b_r': f32((gate(bih, 0) + gate(bhh, 0)).reshape(1, -1)),
        'b_z': f32((gate(bih, 1) + gate(bhh, 1)).reshape(1, -1)),
        'bi_n': f32(gate(bih, 2).reshape(1, -1)),
        'bh_n': f32(gate(bhh, 2).reshape(1, -1)),
        'lw': f32(params['lin_w'].T),
        'lb': f32(params['lin_b'].reshape(1, -1)),
    }


# --------------------------------- wrapper ----------------------------------
def encoder_forward(prepped, xs):
    """xs: (T, B, input_size) time-major (nn.GRU default). Returns (T, B, C)."""
    t_len, b_sz, in_dim = xs.shape
    out_dim = prepped['lw'].shape[1]

    # Pad the batch to the 8-sublane tile so every per-step row slice inside
    # the kernel is tile-aligned.  Padded rows are zeros and are discarded.
    rows = ((b_sz + 7) // 8) * 8
    xs_pad = jnp.zeros((t_len, rows, in_dim), jnp.float32).at[:, :b_sz, :].set(xs)
    xs_flat = xs_pad.reshape(t_len * rows, in_dim)

    args = (xs_flat,
            prepped['wih_r'], prepped['wih_z'], prepped['wih_n'],
            prepped['whh_r'], prepped['whh_z'], prepped['whh_n'],
            prepped['b_r'], prepped['b_z'], prepped['bi_n'], prepped['bh_n'],
            prepped['lw'], prepped['lb'])

    out = pl.pallas_call(
        functools.partial(_encoder_kernel, n_steps=t_len, rows_per_step=rows),
        out_shape=jax.ShapeDtypeStruct((t_len * rows, out_dim), jnp.float32),
        in_specs=[pl.BlockSpec(memory_space=pltpu.MemorySpace.VMEM) for _ in args],
        out_specs=pl.BlockSpec(memory_space=pltpu.MemorySpace.VMEM),
    )(*args)

    return out.reshape(t_len, rows, out_dim)[:, :b_sz, :]


# --------------------------- pure-JAX reference -----------------------------
def encoder_ref(params, xs):
    hid = params['gru_whh'].shape[1]
    wih, whh = params['gru_wih'], params['gru_whh']
    bih, bhh = params['gru_bih'], params['gru_bhh']
    hp = lax.Precision.HIGHEST

    def step(h, x):
        gi = jnp.dot(x, wih.T, precision=hp) + bih
        gh = jnp.dot(h, whh.T, precision=hp) + bhh
        r = jax.nn.sigmoid(gi[:, :hid] + gh[:, :hid])
        z = jax.nn.sigmoid(gi[:, hid:2 * hid] + gh[:, hid:2 * hid])
        n = jnp.tanh(gi[:, 2 * hid:] + r * gh[:, 2 * hid:])
        h_new = (1.0 - z) * n + z * h
        return h_new, h_new

    h0 = jnp.zeros((xs.shape[1], hid), jnp.float32)
    _, hs = lax.scan(step, h0, xs)
    return jnp.dot(hs, params['lin_w'].T, precision=hp) + params['lin_b']


# ------------------------------ parameter init ------------------------------
def init_params(key, in_dim, hid, out_dim):
    ks = jax.random.split(key, 6)
    kg = 1.0 / math.sqrt(hid)     # PyTorch GRU default init
    kl = 1.0 / math.sqrt(hid)     # PyTorch Linear default init (fan_in = hid)
    return {
        'gru_wih': jax.random.uniform(ks[0], (3 * hid, in_dim), jnp.float32, -kg, kg),
        'gru_whh': jax.random.uniform(ks[1], (3 * hid, hid), jnp.float32, -kg, kg),
        'gru_bih': jax.random.uniform(ks[2], (3 * hid,), jnp.float32, -kg, kg),
        'gru_bhh': jax.random.uniform(ks[3], (3 * hid,), jnp.float32, -kg, kg),
        'lin_w': jax.random.uniform(ks[4], (out_dim, hid), jnp.float32, -kl, kl),
        'lin_b': jax.random.uniform(ks[5], (out_dim,), jnp.float32, -kl, kl),
    }


# ----------------------------------- main -----------------------------------
if __name__ == "__main__":
    key = jax.random.PRNGKey(0)
    k_param, k_data = jax.random.split(key)
    params = init_params(k_param, IN, HID, OUT)
    xs = jax.random.normal(k_data, (T, B, IN), jnp.float32)

    prepped = prepare_params(params)          # one-time layout plumbing
    fwd = jax.jit(encoder_forward)
    out = fwd(prepped, xs)
    jax.block_until_ready(out)

    ref = encoder_ref(params, xs)
    assert out.shape == (T, B, OUT), out.shape
    err = float(jnp.max(jnp.abs(out - ref)))
    assert err < 1e-3, f"kernel/reference mismatch: max abs err = {err}"
    print("KERNEL_OK")
</pallas_src>

<mosaic_0001>
module attributes {stable_mosaic.version = 11 : i64} {
  func.func @_encoder_kernel(%arg0: memref<64x4xf32, #tpu.memory_space<vmem>>, %arg1: memref<4x16xf32, #tpu.memory_space<vmem>>, %arg2: memref<4x16xf32, #tpu.memory_space<vmem>>, %arg3: memref<4x16xf32, #tpu.memory_space<vmem>>, %arg4: memref<16x16xf32, #tpu.memory_space<vmem>>, %arg5: memref<16x16xf32, #tpu.memory_space<vmem>>, %arg6: memref<16x16xf32, #tpu.memory_space<vmem>>, %arg7: memref<1x16xf32, #tpu.memory_space<vmem>>, %arg8: memref<1x16xf32, #tpu.memory_space<vmem>>, %arg9: memref<1x16xf32, #tpu.memory_space<vmem>>, %arg10: memref<1x16xf32, #tpu.memory_space<vmem>>, %arg11: memref<16x8xf32, #tpu.memory_space<vmem>>, %arg12: memref<1x8xf32, #tpu.memory_space<vmem>>, %arg13: memref<64x8xf32, #tpu.memory_space<vmem>>) attributes {dimension_semantics = [], scalar_prefetch = 0 : i64, scratch_operands = 0 : i64, tpu.core_type = #tpu.core_type<tc>} {
    %c0 = arith.constant 0 : index
    %c0_0 = arith.constant 0 : index
    %0 = vector.load %arg0[%c0, %c0_0] : memref<64x4xf32, #tpu.memory_space<vmem>>, vector<64x4xf32>
    %c0_1 = arith.constant 0 : index
    %c0_2 = arith.constant 0 : index
    %1 = vector.load %arg1[%c0_1, %c0_2] : memref<4x16xf32, #tpu.memory_space<vmem>>, vector<4x16xf32>
    %cst = arith.constant dense<0.000000e+00> : vector<64x16xf32>
    %2 = tpu.matmul %0, %1, %cst {dimension_numbers = #tpu.dot_dimension_numbers<[1], [0], [0], [1], [0, 0, 1, 1], [], []>} : vector<64x4xf32>, vector<4x16xf32>, vector<64x16xf32> -> vector<64x16xf32>
    %c0_3 = arith.constant 0 : index
    %c0_4 = arith.constant 0 : index
    %3 = vector.load %arg7[%c0_3, %c0_4] : memref<1x16xf32, #tpu.memory_space<vmem>>, vector<1x16xf32>
    %4 = vector.broadcast %3 : vector<1x16xf32> to vector<64x16xf32>
    %5 = arith.addf %2, %4 : vector<64x16xf32>
    %c0_5 = arith.constant 0 : index
    %c0_6 = arith.constant 0 : index
    %6 = vector.load %arg2[%c0_5, %c0_6] : memref<4x16xf32, #tpu.memory_space<vmem>>, vector<4x16xf32>
    %cst_7 = arith.constant dense<0.000000e+00> : vector<64x16xf32>
    %7 = tpu.matmul %0, %6, %cst_7 {dimension_numbers = #tpu.dot_dimension_numbers<[1], [0], [0], [1], [0, 0, 1, 1], [], []>} : vector<64x4xf32>, vector<4x16xf32>, vector<64x16xf32> -> vector<64x16xf32>
    %c0_8 = arith.constant 0 : index
    %c0_9 = arith.constant 0 : index
    %8 = vector.load %arg8[%c0_8, %c0_9] : memref<1x16xf32, #tpu.memory_space<vmem>>, vector<1x16xf32>
    %9 = vector.broadcast %8 : vector<1x16xf32> to vector<64x16xf32>
    %10 = arith.addf %7, %9 : vector<64x16xf32>
    %c0_10 = arith.constant 0 : index
    %c0_11 = arith.constant 0 : index
    %11 = vector.load %arg3[%c0_10, %c0_11] : memref<4x16xf32, #tpu.memory_space<vmem>>, vector<4x16xf32>
    %cst_12 = arith.constant dense<0.000000e+00> : vector<64x16xf32>
    %12 = tpu.matmul %0, %11, %cst_12 {dimension_numbers = #tpu.dot_dimension_numbers<[1], [0], [0], [1], [0, 0, 1, 1], [], []>} : vector<64x4xf32>, vector<4x16xf32>, vector<64x16xf32> -> vector<64x16xf32>
    %c0_13 = arith.constant 0 : index
    %c0_14 = arith.constant 0 : index
    %13 = vector.load %arg9[%c0_13, %c0_14] : memref<1x16xf32, #tpu.memory_space<vmem>>, vector<1x16xf32>
    %14 = vector.broadcast %13 : vector<1x16xf32> to vector<64x16xf32>
    %15 = arith.addf %12, %14 : vector<64x16xf32>
    %c0_15 = arith.constant 0 : index
    %c0_16 = arith.constant 0 : index
    %16 = vector.load %arg4[%c0_15, %c0_16] : memref<16x16xf32, #tpu.memory_space<vmem>>, vector<16x16xf32>
    %c0_17 = arith.constant 0 : index
    %c0_18 = arith.constant 0 : index
    %17 = vector.load %arg5[%c0_17, %c0_18] : memref<16x16xf32, #tpu.memory_space<vmem>>, vector<16x16xf32>
    %c0_19 = arith.constant 0 : index
    %c0_20 = arith.constant 0 : index
    %18 = vector.load %arg6[%c0_19, %c0_20] : memref<16x16xf32, #tpu.memory_space<vmem>>, vector<16x16xf32>
    %c0_21 = arith.constant 0 : index
    %c0_22 = arith.constant 0 : index
    %19 = vector.load %arg10[%c0_21, %c0_22] : memref<1x16xf32, #tpu.memory_space<vmem>>, vector<1x16xf32>
    %cst_23 = arith.constant 0.000000e+00 : f32
    %20 = vector.broadcast %cst_23 : f32 to vector<8x16xf32>
    %cst_24 = arith.constant dense<0.000000e+00> : vector<8x16xf32>
    %21 = tpu.matmul %20, %16, %cst_24 {dimension_numbers = #tpu.dot_dimension_numbers<[1], [0], [0], [1], [0, 0, 1, 1], [], []>} : vector<8x16xf32>, vector<16x16xf32>, vector<8x16xf32> -> vector<8x16xf32>
    %cst_25 = arith.constant dense<0.000000e+00> : vector<8x16xf32>
    %22 = tpu.matmul %20, %17, %cst_25 {dimension_numbers = #tpu.dot_dimension_numbers<[1], [0], [0], [1], [0, 0, 1, 1], [], []>} : vector<8x16xf32>, vector<16x16xf32>, vector<8x16xf32> -> vector<8x16xf32>
    %cst_26 = arith.constant dense<0.000000e+00> : vector<8x16xf32>
    %23 = tpu.matmul %20, %18, %cst_26 {dimension_numbers = #tpu.dot_dimension_numbers<[1], [0], [0], [1], [0, 0, 1, 1], [], []>} : vector<8x16xf32>, vector<16x16xf32>, vector<8x16xf32> -> vector<8x16xf32>
    %24 = vector.broadcast %19 : vector<1x16xf32> to vector<8x16xf32>
    %25 = arith.addf %23, %24 : vector<8x16xf32>
    %26 = vector.extract_strided_slice %5 {offsets = [0, 0], sizes = [8, 16], strides = [1, 1]} : vector<64x16xf32> to vector<8x16xf32>
    %27 = arith.addf %26, %21 : vector<8x16xf32>
    %cst_27 = arith.constant 5.000000e-01 : f32
    %28 = vector.broadcast %cst_27 : f32 to vector<8x16xf32>
    %29 = arith.mulf %28, %27 : vector<8x16xf32>
    %30 = math.tanh %29 : vector<8x16xf32>
    %cst_28 = arith.constant 5.000000e-01 : f32
    %31 = vector.broadcast %cst_28 : f32 to vector<8x16xf32>
    %32 = arith.mulf %31, %30 : vector<8x16xf32>
    %cst_29 = arith.constant 5.000000e-01 : f32
    %33 = vector.broadcast %cst_29 : f32 to vector<8x16xf32>
    %34 = arith.addf %32, %33 : vector<8x16xf32>
    %35 = vector.extract_strided_slice %10 {offsets = [0, 0], sizes = [8, 16], strides = [1, 1]} : vector<64x16xf32> to vector<8x16xf32>
    %36 = arith.addf %35, %22 : vector<8x16xf32>
    %cst_30 = arith.constant 5.000000e-01 : f32
    %37 = vector.broadcast %cst_30 : f32 to vector<8x16xf32>
    %38 = arith.mulf %37, %36 : vector<8x16xf32>
    %39 = math.tanh %38 : vector<8x16xf32>
    %cst_31 = arith.constant 5.000000e-01 : f32
    %40 = vector.broadcast %cst_31 : f32 to vector<8x16xf32>
    %41 = arith.mulf %40, %39 : vector<8x16xf32>
    %cst_32 = arith.constant 5.000000e-01 : f32
    %42 = vector.broadcast %cst_32 : f32 to vector<8x16xf32>
    %43 = arith.addf %41, %42 : vector<8x16xf32>
    %44 = vector.extract_strided_slice %15 {offsets = [0, 0], sizes = [8, 16], strides = [1, 1]} : vector<64x16xf32> to vector<8x16xf32>
    %45 = arith.mulf %34, %25 : vector<8x16xf32>
    %46 = arith.addf %44, %45 : vector<8x16xf32>
    %47 = math.tanh %46 : vector<8x16xf32>
    %48 = arith.subf %20, %47 : vector<8x16xf32>
    %49 = arith.mulf %43, %48 : vector<8x16xf32>
    %50 = arith.addf %47, %49 : vector<8x16xf32>
    %cst_33 = arith.constant dense<0.000000e+00> : vector<8x16xf32>
    %51 = tpu.matmul %50, %16, %cst_33 {dimension_numbers = #tpu.dot_dimension_numbers<[1], [0], [0], [1], [0, 0, 1, 1], [], []>} : vector<8x16xf32>, vector<16x16xf32>, vector<8x16xf32> -> vector<8x16xf32>
    %cst_34 = arith.constant dense<0.000000e+00> : vector<8x16xf32>
    %52 = tpu.matmul %50, %17, %cst_34 {dimension_numbers = #tpu.dot_dimension_numbers<[1], [0], [0], [1], [0, 0, 1, 1], [], []>} : vector<8x16xf32>, vector<16x16xf32>, vector<8x16xf32> -> vector<8x16xf32>
    %cst_35 = arith.constant dense<0.000000e+00> : vector<8x16xf32>
    %53 = tpu.matmul %50, %18, %cst_35 {dimension_numbers = #tpu.dot_dimension_numbers<[1], [0], [0], [1], [0, 0, 1, 1], [], []>} : vector<8x16xf32>, vector<16x16xf32>, vector<8x16xf32> -> vector<8x16xf32>
    %54 = vector.broadcast %19 : vector<1x16xf32> to vector<8x16xf32>
    %55 = arith.addf %53, %54 : vector<8x16xf32>
    %56 = vector.extract_strided_slice %5 {offsets = [8, 0], sizes = [8, 16], strides = [1, 1]} : vector<64x16xf32> to vector<8x16xf32>
    %57 = arith.addf %56, %51 : vector<8x16xf32>
    %cst_36 = arith.constant 5.000000e-01 : f32
    %58 = vector.broadcast %cst_36 : f32 to vector<8x16xf32>
    %59 = arith.mulf %58, %57 : vector<8x16xf32>
    %60 = math.tanh %59 : vector<8x16xf32>
    %cst_37 = arith.constant 5.000000e-01 : f32
    %61 = vector.broadcast %cst_37 : f32 to vector<8x16xf32>
    %62 = arith.mulf %61, %60 : vector<8x16xf32>
    %cst_38 = arith.constant 5.000000e-01 : f32
    %63 = vector.broadcast %cst_38 : f32 to vector<8x16xf32>
    %64 = arith.addf %62, %63 : vector<8x16xf32>
    %65 = vector.extract_strided_slice %10 {offsets = [8, 0], sizes = [8, 16], strides = [1, 1]} : vector<64x16xf32> to vector<8x16xf32>
    %66 = arith.addf %65, %52 : vector<8x16xf32>
    %cst_39 = arith.constant 5.000000e-01 : f32
    %67 = vector.broadcast %cst_39 : f32 to vector<8x16xf32>
    %68 = arith.mulf %67, %66 : vector<8x16xf32>
    %69 = math.tanh %68 : vector<8x16xf32>
    %cst_40 = arith.constant 5.000000e-01 : f32
    %70 = vector.broadcast %cst_40 : f32 to vector<8x16xf32>
    %71 = arith.mulf %70, %69 : vector<8x16xf32>
    %cst_41 = arith.constant 5.000000e-01 : f32
    %72 = vector.broadcast %cst_41 : f32 to vector<8x16xf32>
    %73 = arith.addf %71, %72 : vector<8x16xf32>
    %74 = vector.extract_strided_slice %15 {offsets = [8, 0], sizes = [8, 16], strides = [1, 1]} : vector<64x16xf32> to vector<8x16xf32>
    %75 = arith.mulf %64, %55 : vector<8x16xf32>
    %76 = arith.addf %74, %75 : vector<8x16xf32>
    %77 = math.tanh %76 : vector<8x16xf32>
    %78 = arith.subf %50, %77 : vector<8x16xf32>
    %79 = arith.mulf %73, %78 : vector<8x16xf32>
    %80 = arith.addf %77, %79 : vector<8x16xf32>
    %cst_42 = arith.constant dense<0.000000e+00> : vector<8x16xf32>
    %81 = tpu.matmul %80, %16, %cst_42 {dimension_numbers = #tpu.dot_dimension_numbers<[1], [0], [0], [1], [0, 0, 1, 1], [], []>} : vector<8x16xf32>, vector<16x16xf32>, vector<8x16xf32> -> vector<8x16xf32>
    %cst_43 = arith.constant dense<0.000000e+00> : vector<8x16xf32>
    %82 = tpu.matmul %80, %17, %cst_43 {dimension_numbers = #tpu.dot_dimension_numbers<[1], [0], [0], [1], [0, 0, 1, 1], [], []>} : vector<8x16xf32>, vector<16x16xf32>, vector<8x16xf32> -> vector<8x16xf32>
    %cst_44 = arith.constant dense<0.000000e+00> : vector<8x16xf32>
    %83 = tpu.matmul %80, %18, %cst_44 {dimension_numbers = #tpu.dot_dimension_numbers<[1], [0], [0], [1], [0, 0, 1, 1], [], []>} : vector<8x16xf32>, vector<16x16xf32>, vector<8x16xf32> -> vector<8x16xf32>
    %84 = vector.broadcast %19 : vector<1x16xf32> to vector<8x16xf32>
    %85 = arith.addf %83, %84 : vector<8x16xf32>
    %86 = vector.extract_strided_slice %5 {offsets = [16, 0], sizes = [8, 16], strides = [1, 1]} : vector<64x16xf32> to vector<8x16xf32>
    %87 = arith.addf %86, %81 : vector<8x16xf32>
    %cst_45 = arith.constant 5.000000e-01 : f32
    %88 = vector.broadcast %cst_45 : f32 to vector<8x16xf32>
    %89 = arith.mulf %88, %87 : vector<8x16xf32>
    %90 = math.tanh %89 : vector<8x16xf32>
    %cst_46 = arith.constant 5.000000e-01 : f32
    %91 = vector.broadcast %cst_46 : f32 to vector<8x16xf32>
    %92 = arith.mulf %91, %90 : vector<8x16xf32>
    %cst_47 = arith.constant 5.000000e-01 : f32
    %93 = vector.broadcast %cst_47 : f32 to vector<8x16xf32>
    %94 = arith.addf %92, %93 : vector<8x16xf32>
    %95 = vector.extract_strided_slice %10 {offsets = [16, 0], sizes = [8, 16], strides = [1, 1]} : vector<64x16xf32> to vector<8x16xf32>
    %96 = arith.addf %95, %82 : vector<8x16xf32>
    %cst_48 = arith.constant 5.000000e-01 : f32
    %97 = vector.broadcast %cst_48 : f32 to vector<8x16xf32>
    %98 = arith.mulf %97, %96 : vector<8x16xf32>
    %99 = math.tanh %98 : vector<8x16xf32>
    %cst_49 = arith.constant 5.000000e-01 : f32
    %100 = vector.broadcast %cst_49 : f32 to vector<8x16xf32>
    %101 = arith.mulf %100, %99 : vector<8x16xf32>
    %cst_50 = arith.constant 5.000000e-01 : f32
    %102 = vector.broadcast %cst_50 : f32 to vector<8x16xf32>
    %103 = arith.addf %101, %102 : vector<8x16xf32>
    %104 = vector.extract_strided_slice %15 {offsets = [16, 0], sizes = [8, 16], strides = [1, 1]} : vector<64x16xf32> to vector<8x16xf32>
    %105 = arith.mulf %94, %85 : vector<8x16xf32>
    %106 = arith.addf %104, %105 : vector<8x16xf32>
    %107 = math.tanh %106 : vector<8x16xf32>
    %108 = arith.subf %80, %107 : vector<8x16xf32>
    %109 = arith.mulf %103, %108 : vector<8x16xf32>
    %110 = arith.addf %107, %109 : vector<8x16xf32>
    %cst_51 = arith.constant dense<0.000000e+00> : vector<8x16xf32>
    %111 = tpu.matmul %110, %16, %cst_51 {dimension_numbers = #tpu.dot_dimension_numbers<[1], [0], [0], [1], [0, 0, 1, 1], [], []>} : vector<8x16xf32>, vector<16x16xf32>, vector<8x16xf32> -> vector<8x16xf32>
    %cst_52 = arith.constant dense<0.000000e+00> : vector<8x16xf32>
    %112 = tpu.matmul %110, %17, %cst_52 {dimension_numbers = #tpu.dot_dimension_numbers<[1], [0], [0], [1], [0, 0, 1, 1], [], []>} : vector<8x16xf32>, vector<16x16xf32>, vector<8x16xf32> -> vector<8x16xf32>
    %cst_53 = arith.constant dense<0.000000e+00> : vector<8x16xf32>
    %113 = tpu.matmul %110, %18, %cst_53 {dimension_numbers = #tpu.dot_dimension_numbers<[1], [0], [0], [1], [0, 0, 1, 1], [], []>} : vector<8x16xf32>, vector<16x16xf32>, vector<8x16xf32> -> vector<8x16xf32>
    %114 = vector.broadcast %19 : vector<1x16xf32> to vector<8x16xf32>
    %115 = arith.addf %113, %114 : vector<8x16xf32>
    %116 = vector.extract_strided_slice %5 {offsets = [24, 0], sizes = [8, 16], strides = [1, 1]} : vector<64x16xf32> to vector<8x16xf32>
    %117 = arith.addf %116, %111 : vector<8x16xf32>
    %cst_54 = arith.constant 5.000000e-01 : f32
    %118 = vector.broadcast %cst_54 : f32 to vector<8x16xf32>
    %119 = arith.mulf %118, %117 : vector<8x16xf32>
    %120 = math.tanh %119 : vector<8x16xf32>
    %cst_55 = arith.constant 5.000000e-01 : f32
    %121 = vector.broadcast %cst_55 : f32 to vector<8x16xf32>
    %122 = arith.mulf %121, %120 : vector<8x16xf32>
    %cst_56 = arith.constant 5.000000e-01 : f32
    %123 = vector.broadcast %cst_56 : f32 to vector<8x16xf32>
    %124 = arith.addf %122, %123 : vector<8x16xf32>
    %125 = vector.extract_strided_slice %10 {offsets = [24, 0], sizes = [8, 16], strides = [1, 1]} : vector<64x16xf32> to vector<8x16xf32>
    %126 = arith.addf %125, %112 : vector<8x16xf32>
    %cst_57 = arith.constant 5.000000e-01 : f32
    %127 = vector.broadcast %cst_57 : f32 to vector<8x16xf32>
    %128 = arith.mulf %127, %126 : vector<8x16xf32>
    %129 = math.tanh %128 : vector<8x16xf32>
    %cst_58 = arith.constant 5.000000e-01 : f32
    %130 = vector.broadcast %cst_58 : f32 to vector<8x16xf32>
    %131 = arith.mulf %130, %129 : vector<8x16xf32>
    %cst_59 = arith.constant 5.000000e-01 : f32
    %132 = vector.broadcast %cst_59 : f32 to vector<8x16xf32>
    %133 = arith.addf %131, %132 : vector<8x16xf32>
    %134 = vector.extract_strided_slice %15 {offsets = [24, 0], sizes = [8, 16], strides = [1, 1]} : vector<64x16xf32> to vector<8x16xf32>
    %135 = arith.mulf %124, %115 : vector<8x16xf32>
    %136 = arith.addf %134, %135 : vector<8x16xf32>
    %137 = math.tanh %136 : vector<8x16xf32>
    %138 = arith.subf %110, %137 : vector<8x16xf32>
    %139 = arith.mulf %133, %138 : vector<8x16xf32>
    %140 = arith.addf %137, %139 : vector<8x16xf32>
    %cst_60 = arith.constant dense<0.000000e+00> : vector<8x16xf32>
    %141 = tpu.matmul %140, %16, %cst_60 {dimension_numbers = #tpu.dot_dimension_numbers<[1], [0], [0], [1], [0, 0, 1, 1], [], []>} : vector<8x16xf32>, vector<16x16xf32>, vector<8x16xf32> -> vector<8x16xf32>
    %cst_61 = arith.constant dense<0.000000e+00> : vector<8x16xf32>
    %142 = tpu.matmul %140, %17, %cst_61 {dimension_numbers = #tpu.dot_dimension_numbers<[1], [0], [0], [1], [0, 0, 1, 1], [], []>} : vector<8x16xf32>, vector<16x16xf32>, vector<8x16xf32> -> vector<8x16xf32>
    %cst_62 = arith.constant dense<0.000000e+00> : vector<8x16xf32>
    %143 = tpu.matmul %140, %18, %cst_62 {dimension_numbers = #tpu.dot_dimension_numbers<[1], [0], [0], [1], [0, 0, 1, 1], [], []>} : vector<8x16xf32>, vector<16x16xf32>, vector<8x16xf32> -> vector<8x16xf32>
    %144 = vector.broadcast %19 : vector<1x16xf32> to vector<8x16xf32>
    %145 = arith.addf %143, %144 : vector<8x16xf32>
    %146 = vector.extract_strided_slice %5 {offsets = [32, 0], sizes = [8, 16], strides = [1, 1]} : vector<64x16xf32> to vector<8x16xf32>
    %147 = arith.addf %146, %141 : vector<8x16xf32>
    %cst_63 = arith.constant 5.000000e-01 : f32
    %148 = vector.broadcast %cst_63 : f32 to vector<8x16xf32>
    %149 = arith.mulf %148, %147 : vector<8x16xf32>
    %150 = math.tanh %149 : vector<8x16xf32>
    %cst_64 = arith.constant 5.000000e-01 : f32
    %151 = vector.broadcast %cst_64 : f32 to vector<8x16xf32>
    %152 = arith.mulf %151, %150 : vector<8x16xf32>
    %cst_65 = arith.constant 5.000000e-01 : f32
    %153 = vector.broadcast %cst_65 : f32 to vector<8x16xf32>
    %154 = arith.addf %152, %153 : vector<8x16xf32>
    %155 = vector.extract_strided_slice %10 {offsets = [32, 0], sizes = [8, 16], strides = [1, 1]} : vector<64x16xf32> to vector<8x16xf32>
    %156 = arith.addf %155, %142 : vector<8x16xf32>
    %cst_66 = arith.constant 5.000000e-01 : f32
    %157 = vector.broadcast %cst_66 : f32 to vector<8x16xf32>
    %158 = arith.mulf %157, %156 : vector<8x16xf32>
    %159 = math.tanh %158 : vector<8x16xf32>
    %cst_67 = arith.constant 5.000000e-01 : f32
    %160 = vector.broadcast %cst_67 : f32 to vector<8x16xf32>
    %161 = arith.mulf %160, %159 : vector<8x16xf32>
    %cst_68 = arith.constant 5.000000e-01 : f32
    %162 = vector.broadcast %cst_68 : f32 to vector<8x16xf32>
    %163 = arith.addf %161, %162 : vector<8x16xf32>
    %164 = vector.extract_strided_slice %15 {offsets = [32, 0], sizes = [8, 16], strides = [1, 1]} : vector<64x16xf32> to vector<8x16xf32>
    %165 = arith.mulf %154, %145 : vector<8x16xf32>
    %166 = arith.addf %164, %165 : vector<8x16xf32>
    %167 = math.tanh %166 : vector<8x16xf32>
    %168 = arith.subf %140, %167 : vector<8x16xf32>
    %169 = arith.mulf %163, %168 : vector<8x16xf32>
    %170 = arith.addf %167, %169 : vector<8x16xf32>
    %cst_69 = arith.constant dense<0.000000e+00> : vector<8x16xf32>
    %171 = tpu.matmul %170, %16, %cst_69 {dimension_numbers = #tpu.dot_dimension_numbers<[1], [0], [0], [1], [0, 0, 1, 1], [], []>} : vector<8x16xf32>, vector<16x16xf32>, vector<8x16xf32> -> vector<8x16xf32>
    %cst_70 = arith.constant dense<0.000000e+00> : vector<8x16xf32>
    %172 = tpu.matmul %170, %17, %cst_70 {dimension_numbers = #tpu.dot_dimension_numbers<[1], [0], [0], [1], [0, 0, 1, 1], [], []>} : vector<8x16xf32>, vector<16x16xf32>, vector<8x16xf32> -> vector<8x16xf32>
    %cst_71 = arith.constant dense<0.000000e+00> : vector<8x16xf32>
    %173 = tpu.matmul %170, %18, %cst_71 {dimension_numbers = #tpu.dot_dimension_numbers<[1], [0], [0], [1], [0, 0, 1, 1], [], []>} : vector<8x16xf32>, vector<16x16xf32>, vector<8x16xf32> -> vector<8x16xf32>
    %174 = vector.broadcast %19 : vector<1x16xf32> to vector<8x16xf32>
    %175 = arith.addf %173, %174 : vector<8x16xf32>
    %176 = vector.extract_strided_slice %5 {offsets = [40, 0], sizes = [8, 16], strides = [1, 1]} : vector<64x16xf32> to vector<8x16xf32>
    %177 = arith.addf %176, %171 : vector<8x16xf32>
    %cst_72 = arith.constant 5.000000e-01 : f32
    %178 = vector.broadcast %cst_72 : f32 to vector<8x16xf32>
    %179 = arith.mulf %178, %177 : vector<8x16xf32>
    %180 = math.tanh %179 : vector<8x16xf32>
    %cst_73 = arith.constant 5.000000e-01 : f32
    %181 = vector.broadcast %cst_73 : f32 to vector<8x16xf32>
    %182 = arith.mulf %181, %180 : vector<8x16xf32>
    %cst_74 = arith.constant 5.000000e-01 : f32
    %183 = vector.broadcast %cst_74 : f32 to vector<8x16xf32>
    %184 = arith.addf %182, %183 : vector<8x16xf32>
    %185 = vector.extract_strided_slice %10 {offsets = [40, 0], sizes = [8, 16], strides = [1, 1]} : vector<64x16xf32> to vector<8x16xf32>
    %186 = arith.addf %185, %172 : vector<8x16xf32>
    %cst_75 = arith.constant 5.000000e-01 : f32
    %187 = vector.broadcast %cst_75 : f32 to vector<8x16xf32>
    %188 = arith.mulf %187, %186 : vector<8x16xf32>
    %189 = math.tanh %188 : vector<8x16xf32>
    %cst_76 = arith.constant 5.000000e-01 : f32
    %190 = vector.broadcast %cst_76 : f32 to vector<8x16xf32>
    %191 = arith.mulf %190, %189 : vector<8x16xf32>
    %cst_77 = arith.constant 5.000000e-01 : f32
    %192 = vector.broadcast %cst_77 : f32 to vector<8x16xf32>
    %193 = arith.addf %191, %192 : vector<8x16xf32>
    %194 = vector.extract_strided_slice %15 {offsets = [40, 0], sizes = [8, 16], strides = [1, 1]} : vector<64x16xf32> to vector<8x16xf32>
    %195 = arith.mulf %184, %175 : vector<8x16xf32>
    %196 = arith.addf %194, %195 : vector<8x16xf32>
    %197 = math.tanh %196 : vector<8x16xf32>
    %198 = arith.subf %170, %197 : vector<8x16xf32>
    %199 = arith.mulf %193, %198 : vector<8x16xf32>
    %200 = arith.addf %197, %199 : vector<8x16xf32>
    %cst_78 = arith.constant dense<0.000000e+00> : vector<8x16xf32>
    %201 = tpu.matmul %200, %16, %cst_78 {dimension_numbers = #tpu.dot_dimension_numbers<[1], [0], [0], [1], [0, 0, 1, 1], [], []>} : vector<8x16xf32>, vector<16x16xf32>, vector<8x16xf32> -> vector<8x16xf32>
    %cst_79 = arith.constant dense<0.000000e+00> : vector<8x16xf32>
    %202 = tpu.matmul %200, %17, %cst_79 {dimension_numbers = #tpu.dot_dimension_numbers<[1], [0], [0], [1], [0, 0, 1, 1], [], []>} : vector<8x16xf32>, vector<16x16xf32>, vector<8x16xf32> -> vector<8x16xf32>
    %cst_80 = arith.constant dense<0.000000e+00> : vector<8x16xf32>
    %203 = tpu.matmul %200, %18, %cst_80 {dimension_numbers = #tpu.dot_dimension_numbers<[1], [0], [0], [1], [0, 0, 1, 1], [], []>} : vector<8x16xf32>, vector<16x16xf32>, vector<8x16xf32> -> vector<8x16xf32>
    %204 = vector.broadcast %19 : vector<1x16xf32> to vector<8x16xf32>
    %205 = arith.addf %203, %204 : vector<8x16xf32>
    %206 = vector.extract_strided_slice %5 {offsets = [48, 0], sizes = [8, 16], strides = [1, 1]} : vector<64x16xf32> to vector<8x16xf32>
    %207 = arith.addf %206, %201 : vector<8x16xf32>
    %cst_81 = arith.constant 5.000000e-01 : f32
    %208 = vector.broadcast %cst_81 : f32 to vector<8x16xf32>
    %209 = arith.mulf %208, %207 : vector<8x16xf32>
    %210 = math.tanh %209 : vector<8x16xf32>
    %cst_82 = arith.constant 5.000000e-01 : f32
    %211 = vector.broadcast %cst_82 : f32 to vector<8x16xf32>
    %212 = arith.mulf %211, %210 : vector<8x16xf32>
    %cst_83 = arith.constant 5.000000e-01 : f32
    %213 = vector.broadcast %cst_83 : f32 to vector<8x16xf32>
    %214 = arith.addf %212, %213 : vector<8x16xf32>
    %215 = vector.extract_strided_slice %10 {offsets = [48, 0], sizes = [8, 16], strides = [1, 1]} : vector<64x16xf32> to vector<8x16xf32>
    %216 = arith.addf %215, %202 : vector<8x16xf32>
    %cst_84 = arith.constant 5.000000e-01 : f32
    %217 = vector.broadcast %cst_84 : f32 to vector<8x16xf32>
    %218 = arith.mulf %217, %216 : vector<8x16xf32>
    %219 = math.tanh %218 : vector<8x16xf32>
    %cst_85 = arith.constant 5.000000e-01 : f32
    %220 = vector.broadcast %cst_85 : f32 to vector<8x16xf32>
    %221 = arith.mulf %220, %219 : vector<8x16xf32>
    %cst_86 = arith.constant 5.000000e-01 : f32
    %222 = vector.broadcast %cst_86 : f32 to vector<8x16xf32>
    %223 = arith.addf %221, %222 : vector<8x16xf32>
    %224 = vector.extract_strided_slice %15 {offsets = [48, 0], sizes = [8, 16], strides = [1, 1]} : vector<64x16xf32> to vector<8x16xf32>
    %225 = arith.mulf %214, %205 : vector<8x16xf32>
    %226 = arith.addf %224, %225 : vector<8x16xf32>
    %227 = math.tanh %226 : vector<8x16xf32>
    %228 = arith.subf %200, %227 : vector<8x16xf32>
    %229 = arith.mulf %223, %228 : vector<8x16xf32>
    %230 = arith.addf %227, %229 : vector<8x16xf32>
    %cst_87 = arith.constant dense<0.000000e+00> : vector<8x16xf32>
    %231 = tpu.matmul %230, %16, %cst_87 {dimension_numbers = #tpu.dot_dimension_numbers<[1], [0], [0], [1], [0, 0, 1, 1], [], []>} : vector<8x16xf32>, vector<16x16xf32>, vector<8x16xf32> -> vector<8x16xf32>
    %cst_88 = arith.constant dense<0.000000e+00> : vector<8x16xf32>
    %232 = tpu.matmul %230, %17, %cst_88 {dimension_numbers = #tpu.dot_dimension_numbers<[1], [0], [0], [1], [0, 0, 1, 1], [], []>} : vector<8x16xf32>, vector<16x16xf32>, vector<8x16xf32> -> vector<8x16xf32>
    %cst_89 = arith.constant dense<0.000000e+00> : vector<8x16xf32>
    %233 = tpu.matmul %230, %18, %cst_89 {dimension_numbers = #tpu.dot_dimension_numbers<[1], [0], [0], [1], [0, 0, 1, 1], [], []>} : vector<8x16xf32>, vector<16x16xf32>, vector<8x16xf32> -> vector<8x16xf32>
    %234 = vector.broadcast %19 : vector<1x16xf32> to vector<8x16xf32>
    %235 = arith.addf %233, %234 : vector<8x16xf32>
    %236 = vector.extract_strided_slice %5 {offsets = [56, 0], sizes = [8, 16], strides = [1, 1]} : vector<64x16xf32> to vector<8x16xf32>
    %237 = arith.addf %236, %231 : vector<8x16xf32>
    %cst_90 = arith.constant 5.000000e-01 : f32
    %238 = vector.broadcast %cst_90 : f32 to vector<8x16xf32>
    %239 = arith.mulf %238, %237 : vector<8x16xf32>
    %240 = math.tanh %239 : vector<8x16xf32>
    %cst_91 = arith.constant 5.000000e-01 : f32
    %241 = vector.broadcast %cst_91 : f32 to vector<8x16xf32>
    %242 = arith.mulf %241, %240 : vector<8x16xf32>
    %cst_92 = arith.constant 5.000000e-01 : f32
    %243 = vector.broadcast %cst_92 : f32 to vector<8x16xf32>
    %244 = arith.addf %242, %243 : vector<8x16xf32>
    %245 = vector.extract_strided_slice %10 {offsets = [56, 0], sizes = [8, 16], strides = [1, 1]} : vector<64x16xf32> to vector<8x16xf32>
    %246 = arith.addf %245, %232 : vector<8x16xf32>
    %cst_93 = arith.constant 5.000000e-01 : f32
    %247 = vector.broadcast %cst_93 : f32 to vector<8x16xf32>
    %248 = arith.mulf %247, %246 : vector<8x16xf32>
    %249 = math.tanh %248 : vector<8x16xf32>
    %cst_94 = arith.constant 5.000000e-01 : f32
    %250 = vector.broadcast %cst_94 : f32 to vector<8x16xf32>
    %251 = arith.mulf %250, %249 : vector<8x16xf32>
    %cst_95 = arith.constant 5.000000e-01 : f32
    %252 = vector.broadcast %cst_95 : f32 to vector<8x16xf32>
    %253 = arith.addf %251, %252 : vector<8x16xf32>
    %254 = vector.extract_strided_slice %15 {offsets = [56, 0], sizes = [8, 16], strides = [1, 1]} : vector<64x16xf32> to vector<8x16xf32>
    %255 = arith.mulf %244, %235 : vector<8x16xf32>
    %256 = arith.addf %254, %255 : vector<8x16xf32>
    %257 = math.tanh %256 : vector<8x16xf32>
    %258 = arith.subf %230, %257 : vector<8x16xf32>
    %259 = arith.mulf %253, %258 : vector<8x16xf32>
    %260 = arith.addf %257, %259 : vector<8x16xf32>
    %261 = tpu.concatenate %50, %80, %110, %140, %170, %200, %230, %260 in 0 : vector<8x16xf32>, vector<8x16xf32>, vector<8x16xf32>, vector<8x16xf32>, vector<8x16xf32>, vector<8x16xf32>, vector<8x16xf32>, vector<8x16xf32> -> vector<64x16xf32>
    %c0_96 = arith.constant 0 : index
    %c0_97 = arith.constant 0 : index
    %262 = vector.load %arg11[%c0_96, %c0_97] : memref<16x8xf32, #tpu.memory_space<vmem>>, vector<16x8xf32>
    %cst_98 = arith.constant dense<0.000000e+00> : vector<64x8xf32>
    %263 = tpu.matmul %261, %262, %cst_98 {dimension_numbers = #tpu.dot_dimension_numbers<[1], [0], [0], [1], [0, 0, 1, 1], [], []>} : vector<64x16xf32>, vector<16x8xf32>, vector<64x8xf32> -> vector<64x8xf32>
    %c0_99 = arith.constant 0 : index
    %c0_100 = arith.constant 0 : index
    %264 = vector.load %arg12[%c0_99, %c0_100] : memref<1x8xf32, #tpu.memory_space<vmem>>, vector<1x8xf32>
    %265 = vector.broadcast %264 : vector<1x8xf32> to vector<64x8xf32>
    %266 = arith.addf %263, %265 : vector<64x8xf32>
    %c0_101 = arith.constant 0 : index
    %c0_102 = arith.constant 0 : index
    %267 = vector.load %arg13[%c0_101, %c0_102] : memref<64x8xf32, #tpu.memory_space<vmem>>, vector<64x8xf32>
    tpu.vector_store %arg13[%c0_101, %c0_102], %266 {strides = array<i32>} : memref<64x8xf32, #tpu.memory_space<vmem>>, vector<64x8xf32>,
    return
  }
}

</mosaic_0001>

<bundles_post_ra>
// kernel: encoder_forward.1
= control target key start
LH: loop header
LB: loop body
LE: loop exit
PB: predicated region body
PF: predicated region fallthrough
CT: control target
= control target key end

     0   :  { %vm82_vm0 = vcmask 1043456   ;;  %vm57_vm1 = vcmask 31744   ;;  %v1044_v16 = vmov 0.0   ;;  %vm232_vm2 = vcmask 130048   ;;  %s1482_s1 = inlined_call_operand.vmem [shape: f32[4,16], index: 1, kind: input, shape index: {}]   ;;  %s1483_s0 = inlined_call_operand.vmem [shape: f32[64,4], index: 0, kind: input, shape index: {}]   ;;  %s1484_s4 = inlined_call_operand.vmem [shape: f32[16,16], index: 4, kind: input, shape index: {}]   ;;  %s1485_s3 = inlined_call_operand.vmem [shape: f32[4,16], index: 3, kind: input, shape index: {}]   ;;  %s1486_s5 = inlined_call_operand.vmem [shape: f32[16,16], index: 5, kind: input, shape index: {}]   ;;  %s1487_s2 = inlined_call_operand.vmem [shape: f32[4,16], index: 2, kind: input, shape index: {}]   ;;  %s1488_s6 = inlined_call_operand.vmem [shape: f32[16,16], index: 6, kind: input, shape index: {}]   ;;  %s1489_s7 = inlined_call_operand.vmem [shape: f32[1,16], index: 7, kind: input, shape index: {}]   ;;  %s1490_s8 = inlined_call_operand.vmem [shape: f32[1,16], index: 8, kind: input, shape index: {}]   ;;  %s1491_s10 = inlined_call_operand.vmem [shape: f32[1,16], index: 10, kind: input, shape index: {}]   ;;  %s1492_s9 = inlined_call_operand.vmem [shape: f32[1,16], index: 9, kind: input, shape index: {}]   ;;  %s1493_s11 = inlined_call_operand.vmem [shape: f32[16,8], index: 11, kind: input, shape index: {}]   ;;  %s1494_s12 = inlined_call_operand.vmem [shape: f32[1,8], index: 12, kind: input, shape index: {}]   ;;  %s1495_s13 = inlined_call_operand.vmem [shape: f32[64,8], index: 13, kind: output, shape index: {}]  }
   0x1   :  { %v52_v0 = vld [vmem:[%s1482_s1] sm:$0xf]  ;;  %v1121_v1 = vld [vmem:[%s1483_s0 + $0x30] sm:$0xff]  ;;  %v1126_v2 = vld [vmem:[%s1484_s4 + $0x8] sm:$0xff]  ;;  %vm918_vm3 = vcmask 64512  }
   0x2   :  { %989 = vmatpush.msk.msra.mxu3 %vm82_vm0, %v52_v0  ;;  %987 = vmatpush.msk.msra.mxu1 %vm82_vm0, %v52_v0  ;;  %v1133_v3 = vld [vmem:[%s1483_s0 + $0x10] sm:$0xff]  ;;  %v1140_v4 = vld [vmem:[%s1484_s4] sm:$0xff]  ;;  %v1156_v7 = vld [vmem:[%s1486_s5 + $0x8] sm:$0xff] }
   0x3   :  { %938 = vmatmul.msk.f32.vlgmr.msra.gmra.mxu3 %vm57_vm1, %v1121_v1  ;;  %934 = vmatmul.msk.f32.vlgmr.msra.gmra.mxu1 %vm57_vm1, %v1133_v3  ;;  %v1147_v5 = vld [vmem:[%s1483_s0 + $0x20] sm:$0xff]  ;;  %v1180_v11 = vld [vmem:[%s1488_s6 + $0x8] sm:$0xff]  ;;  %v1185_v12 = vld [vmem:[%s1483_s0 + $0x38] sm:$0xff] }
   0x4   :  { %v176_v6 = vld [vmem:[%s1485_s3] sm:$0xf]  ;;  %250 = vmatpush.msrb.mxu3 %v1126_v2  ;;  %988 = vmatpush.msk.msra.mxu2 %vm82_vm0, %v52_v0  ;;  %v1190_v13 = vld [vmem:[%s1483_s0 + $0x18] sm:$0xff]  ;;  %v1204_v15 = vld [vmem:[%s1483_s0 + $0x28] sm:$0xff] }
   0x5   :  { %v44_v8 = vld [vmem:[%s1483_s0] sm:$0xff]  ;;  %936 = vmatmul.msk.f32.vlgmr.msra.gmra.mxu2 %vm57_vm1, %v1147_v5  ;;  %931 = vmatpush.msk.msra.mxu0 %vm82_vm0, %v52_v0  ;;  %v45_v31 = vld [vmem:[%s1483_s0 + $0x8] sm:$0xff] }
   0x6   :  { %v127_v9 = vld [vmem:[%s1487_s2] sm:$0xf]  ;;  %251 = vmatpush.msrb.mxu3 %v1140_v4  ;;  %949 = vmatpush.msk.msrb.mxu2 %vm82_vm0, %v176_v6 }
   0x7   :  { %v1173_v10 = vld [vmem:[%s1486_s5] sm:$0xff]  ;;  %932 = vmatmul.msk.f32.vlgmr.msra.gmra.mxu0 %vm57_vm1, %v44_v8  ;;  %940 = vmatpush.msk.msrb.mxu1 %vm82_vm0, %v127_v9 }
   0x8   :  { %270 = vmatpush.msra.mxu3 %v1156_v7  ;;  %451 = vmatpush.msrb.mxu0 %v1180_v11  ;;  %v1198_v14 = vld [vmem:[%s1488_s6] sm:$0xff] }
   0x9   :  { %490 = vmatpush.msra.mxu1 %v1126_v2  ;;  %510 = vmatpush.msra.mxu2 %v1156_v7  ;;  %v1243_v23 = vld [vmem:[%s1489_s7] ss:$0 sm:$0xff] }
   0xa   :  { %271 = vmatpush.msra.mxu3 %v1173_v10  ;;  %452 = vmatpush.msrb.mxu0 %v1198_v14  ;;  %v1249_v27 = vld [vmem:[%s1490_s8] ss:$0 sm:$0xff] }
   0xb   :  { %939 = vmatmul.msk.f32.gmra.mxu3 %vm57_vm1, %v1185_v12  ;;  %935 = vmatmul.msk.f32.gmra.mxu1 %vm57_vm1, %v1190_v13  ;;  %v1263_v38 = vld [vmem:[%s1491_s10] ss:$0 sm:$0xff] }
   0xc   :  { %491 = vmatpush.msra.mxu1 %v1140_v4  ;;  %511 = vmatpush.msra.mxu2 %v1173_v10  ;;  %v1268_v39 = vld [vmem:[%s1492_s9] ss:$0 sm:$0xff] }
   0xd   :  { %937 = vmatmul.msk.f32.gmra.mxu2 %vm57_vm1, %v1204_v15  ;;  %569 = vmatpush.msra.mxu0 %v1126_v2 }
   0xf   :  { %570 = vmatpush.msra.mxu0 %v1140_v4 }
  0x10   :  { %933 = vmatmul.msk.f32.gmra.mxu0 %vm57_vm1, %v45_v31 }
  0x13   :  { %252 = vmatmul.f32.vlgmr.msrb.gmra.mxu3 %v1044_v16  ;;  %941 = vmatmul.msk.f32.vlgmr.msrb.gmra.mxu1 %vm57_vm1, %v44_v8 }
  0x14   :  { %293 = vmatpush.msrb.mxu3 %v1180_v11  ;;  %589 = vmatpush.msrb.mxu1 %v1156_v7 }
  0x15   :  { %950 = vmatmul.msk.f32.vlgmr.msrb.gmra.mxu2 %vm57_vm1, %v44_v8 }
  0x16   :  { %294 = vmatpush.msrb.mxu3 %v1198_v14  ;;  %609 = vmatpush.msrb.mxu2 %v1180_v11 }
  0x17   :  { %590 = vmatpush.msrb.mxu1 %v1173_v10 }
  0x18   :  { %610 = vmatpush.msrb.mxu2 %v1198_v14 }
  0x1b   :  { %272 = vmatmul.f32.vlgmr.msra.gmra.mxu3 %v1044_v16  ;;  %942 = vmatmul.msk.f32.gmra.mxu1 %vm57_vm1, %v45_v31 }
  0x1c   :  { %332 = vmatpush.msra.mxu3 %v1126_v2 }
  0x1d   :  { %951 = vmatmul.msk.f32.gmra.mxu2 %vm57_vm1, %v45_v31 }
  0x1e   :  { %333 = vmatpush.msra.mxu3 %v1140_v4 }
  0x23   :  { %295 = vmatmul.f32.vlgmr.msrb.gmra.mxu3 %v1044_v16  ;;  %943 = vmatmul.msk.f32.gmra.mxu1 %vm57_vm1, %v1133_v3 }
  0x24   :  { %352 = vmatpush.msrb.mxu3 %v1156_v7 }
  0x25   :  { %952 = vmatmul.msk.f32.gmra.mxu2 %vm57_vm1, %v1133_v3 }
  0x26   :  { %353 = vmatpush.msrb.mxu3 %v1173_v10 }
  0x2b   :  { %944 = vmatmul.msk.f32.gmra.mxu1 %vm57_vm1, %v1190_v13 }
  0x2d   :  { %953 = vmatmul.msk.f32.gmra.mxu2 %vm57_vm1, %v1190_v13 }
  0x33   :  { %945 = vmatmul.msk.f32.gmra.mxu1 %vm57_vm1, %v1147_v5 }
  0x35   :  { %954 = vmatmul.msk.f32.gmra.mxu2 %vm57_vm1, %v1147_v5 }
  0x3b   :  { %946 = vmatmul.msk.f32.gmra.mxu1 %vm57_vm1, %v1204_v15 }
  0x3d   :  { %955 = vmatmul.msk.f32.gmra.mxu2 %vm57_vm1, %v1204_v15 }
  0x43   :  { %947 = vmatmul.msk.f32.gmra.mxu1 %vm57_vm1, %v1121_v1 }
  0x45   :  { %956 = vmatmul.msk.f32.gmra.mxu2 %vm57_vm1, %v1121_v1 }
  0x4b   :  { %948 = vmatmul.msk.f32.gmra.mxu1 %vm57_vm1, %v1185_v12 }
  0x4d   :  { %957 = vmatmul.msk.f32.gmra.mxu2 %vm57_vm1, %v1185_v12 }
  0x80   :  { %v1230_v17 = vpop.f32.mrf.mxu1 }
  0x84   :  { %v103_v21 = vpop.f32.mrf.mxu0 }
  0x85   :  { %v104_v24 = vadd.f32 %v1243_v23, %v103_v21 }
  0x86   :  { %v1232_v18 = vpop.f32.mrf.mxu3 }
  0x88   :  { %v1236_v20 = vpop.f32.mrf.mxu1  ;;  %v1238_v22 = vpop.f32.mrf.mxu2 }
  0x8d   :  { %v106_v54 = vpop.f32.mrf.mxu0 }
  0x8e   :  { %v1234_v19 = vpop.f32.mrf.mxu3  ;;  %v107_v55 = vadd.f32 %v1243_v23, %v106_v54 }
  0x90   :  { %v152_v28 = vpop.f32.mrf.mxu1  ;;  %v1251_v30 = vpop.f32.mrf.mxu2 }
  0x91   :  { %v153_v32 = vadd.f32 %v1249_v27, %v152_v28 }
  0x96   :  { %v253_v25 = vpop.f32.mrf.mxu3 }
  0x97   :  { %v299_v26 = vadd.f32 %v253_v25, %v104_v24 }
  0x98   :  { %v201_v40 = vpop.f32.mrf.mxu2  ;;  %v155_v58 = vpop.f32.mrf.mxu1 }
  0x99   :  { %v300_v29 = vmul.f32 0.5, %v299_v26  ;;  %v202_v44 = vadd.f32 %v1268_v39, %v201_v40  ;;  %v156_v60 = vadd.f32 %v1249_v27, %v155_v58 }
  0x9b   :  { %996 = vtanh.f32 %v300_v29  ;;  %v110_v29 = vadd.f32 %v1243_v23, %v1230_v17 }
  0x9e   :  { %v273_v33 = vpop.f32.mrf.mxu3 }
  0x9f   :  { %v304_v34 = vadd.f32 %v273_v33, %v153_v32 }
  0xa0   :  { %v204_v3 = vpop.f32.mrf.mxu2  ;;  %v158_v33 = vpop.f32.mrf.mxu1 }
  0xa1   :  { %v997_v35 = vpop.eup %996  ;;  %v305_v37 = vmul.f32 0.5, %v304_v34  ;;  %v205_v9 = vadd.f32 %v1268_v39, %v204_v3 }
  0xa2   :  { %v302_v36 = vmul.f32 0.5, %v997_v35  ;;  %v159_v35 = vadd.f32 %v1249_v27, %v158_v33 }
  0xa3   :  { %998 = vtanh.f32 %v305_v37 }
  0xa4   :  { %v303_v42 = vadd.f32 0.5, %v302_v36 }
  0xa6   :  { %v296_v41 = vpop.f32.mrf.mxu3 }
  0xa7   :  { %v297_v43 = vadd.f32 %v1263_v38, %v296_v41 }
  0xa9   :  { %v309_v45 = vmul.f32 %v303_v42, %v297_v43  ;;  %v999_v47 = vpop.eup %998  ;;  %v207_v43 = vpop.f32.mrf.mxu2 }
  0xaa   :  { %v307_v48 = vmul.f32 0.5, %v999_v47  ;;  %v208_v17 = vadd.f32 %v1268_v39, %v207_v43 }
  0xab   :  { %v310_v46 = vadd.f32 %v309_v45, %v202_v44 }
  0xac   :  { %v308_v50 = vadd.f32 0.5, %v307_v48 }
  0xad   :  { %1000 = vtanh.f32 %v310_v46 }
  0xb1   :  { %v210_v58 = vpop.f32.mrf.mxu2 }
  0xb3   :  { %v1001_v49 = vpop.eup %1000 }
  0xb4   :  { %v312_v51 = vsub.f32 0.0, %v1001_v49 }
  0xb6   :  { %v313_v52 = vmul.f32 %v312_v51, %v308_v50 }
  0xb8   :  { %v1284_v53 = vadd.f32 %v1001_v49, %v313_v52 }
  0xba   :  { %958 = vmatmul.msk.f32.vlgmr.msra.gmra.mxu3 %vm232_vm2, %v1284_v53 }
  0xbb   :  { %372 = vmatpush.msra.mxu3 %v1180_v11 }
  0xbd   :  { %373 = vmatpush.msra.mxu3 %v1198_v14 }
  0xc2   :  { %959 = vmatmul.msk.f32.vlgmr.msrb.gmra.mxu3 %vm232_vm2, %v1284_v53 }
  0xc3   :  { %411 = vmatpush.msrb.mxu3 %v1126_v2 }
  0xc5   :  { %412 = vmatpush.msrb.mxu3 %v1140_v4 }
  0xca   :  { %960 = vmatmul.msk.f32.vlgmr.msra.gmra.mxu3 %vm232_vm2, %v1284_v53 }
  0xcb   :  { %431 = vmatpush.msra.mxu3 %v1156_v7 }
  0xcd   :  { %432 = vmatpush.msra.mxu3 %v1173_v10 }
 0x13d   :  { %v335_v56 = vpop.f32.mrf.mxu3 }
 0x13e   :  { %v378_v57 = vadd.f32 %v335_v56, %v107_v55 }
 0x140   :  { %v379_v59 = vmul.f32 0.5, %v378_v57  ;;  %v161_v57 = vpop.f32.mrf.mxu1 }
 0x142   :  { %1002 = vtanh.f32 %v379_v59 }
 0x145   :  { %v355_v61 = vpop.f32.mrf.mxu3 }
 0x146   :  { %v383_v62 = vadd.f32 %v355_v61, %v156_v60  ;;  %v213_v60 = vpop.f32.mrf.mxu2 }
 0x148   :  { %v1003_v63 = vpop.eup %1002  ;;  %v384_v1 = vmul.f32 0.5, %v383_v62  ;;  %v164_v59 = vpop.f32.mrf.mxu1 }
 0x149   :  { %v381_v0 = vmul.f32 0.5, %v1003_v63 }
 0x14a   :  { %1004 = vtanh.f32 %v384_v1 }
 0x14b   :  { %v382_v6 = vadd.f32 0.5, %v381_v0 }
 0x14d   :  { %v375_v5 = vpop.f32.mrf.mxu3 }
 0x14e   :  { %v376_v8 = vadd.f32 %v1263_v38, %v375_v5  ;;  %v1351_v62 = vpop.f32.mrf.mxu2  ;;  %v113_v5 = vadd.f32 %v1243_v23, %v1236_v20 }
 0x150   :  { %v388_v12 = vmul.f32 %v382_v6, %v376_v8  ;;  %v1005_v15 = vpop.eup %1004  ;;  %v1349_v61 = vpop.f32.mrf.mxu1 }
 0x151   :  { %v386_v16 = vmul.f32 0.5, %v1005_v15 }
 0x152   :  { %v389_v13 = vadd.f32 %v388_v12, %v205_v9  ;;  %v162_v12 = vadd.f32 %v1249_v27, %v161_v57 }
 0x153   :  { %v387_v24 = vadd.f32 0.5, %v386_v16 }
 0x154   :  { %1006 = vtanh.f32 %v389_v13 }
 0x156   :  { %v1355_v0 = vpop.f32.mrf.mxu2 }
 0x158   :  { %v1353_v63 = vpop.f32.mrf.mxu1 }
 0x15a   :  { %v1007_v21 = vpop.eup %1006 }
 0x15b   :  { %v391_v25 = vsub.f32 %v1284_v53, %v1007_v21 }
 0x15d   :  { %v392_v26 = vmul.f32 %v391_v25, %v387_v24 }
 0x15e   :  { %v1359_v3 = vpop.f32.mrf.mxu2 }
 0x15f   :  { %v1315_v28 = vadd.f32 %v1007_v21, %v392_v26 }
 0x160   :  { %v1357_v1 = vpop.f32.mrf.mxu1 }
 0x161   :  { %961 = vmatmul.msk.f32.vlgmr.msrb.gmra.mxu3 %vm232_vm2, %v1315_v28  ;;  %963 = vmatmul.msk.f32.vlgmr.msrb.gmra.mxu0 %vm232_vm2, %v1315_v28 }
 0x162   :  { %530 = vmatpush.msrb.mxu3 %v1180_v11  ;;  %668 = vmatpush.msrb.mxu0 %v1156_v7 }
 0x164   :  { %531 = vmatpush.msrb.mxu3 %v1198_v14  ;;  %669 = vmatpush.msrb.mxu0 %v1173_v10 }
 0x169   :  { %962 = vmatmul.msk.f32.vlgmr.msra.gmra.mxu3 %vm232_vm2, %v1315_v28 }
 0x16a   :  { %648 = vmatpush.msra.mxu3 %v1126_v2 }
 0x16c   :  { %649 = vmatpush.msra.mxu3 %v1140_v4 }
 0x1de   :  { %v454_v41 = vpop.f32.mrf.mxu0 }
 0x1df   :  { %v455_v45 = vadd.f32 %v1263_v38, %v454_v41 }
 0x1e4   :  { %v414_v31 = vpop.f32.mrf.mxu3 }
 0x1e5   :  { %v457_v32 = vadd.f32 %v414_v31, %v110_v29  ;;  %v211_v31 = vadd.f32 %v1268_v39, %v210_v58 }
 0x1e7   :  { %v458_v34 = vmul.f32 0.5, %v457_v32 }
 0x1e9   :  { %1008 = vtanh.f32 %v458_v34 }
 0x1ec   :  { %v434_v36 = vpop.f32.mrf.mxu3 }
 0x1ed   :  { %v462_v37 = vadd.f32 %v434_v36, %v159_v35 }
 0x1ef   :  { %v1009_v40 = vpop.eup %1008  ;;  %v463_v42 = vmul.f32 0.5, %v462_v37 }
 0x1f0   :  { %v460_v44 = vmul.f32 0.5, %v1009_v40 }
 0x1f1   :  { %1010 = vtanh.f32 %v463_v42  ;;  %v116_v42 = vadd.f32 %v1243_v23, %v1238_v22 }
 0x1f2   :  { %v461_v46 = vadd.f32 0.5, %v460_v44 }
 0x1f4   :  { %v467_v47 = vmul.f32 %v461_v46, %v455_v45 }
 0x1f6   :  { %v468_v48 = vadd.f32 %v467_v47, %v208_v17  ;;  %v165_v17 = vadd.f32 %v1249_v27, %v164_v59 }
 0x1f7   :  { %v1011_v49 = vpop.eup %1010 }
 0x1f8   :  { %1012 = vtanh.f32 %v468_v48  ;;  %v465_v50 = vmul.f32 0.5, %v1011_v49 }
 0x1fa   :  { %v466_v52 = vadd.f32 0.5, %v465_v50 }
 0x1fe   :  { %v1013_v51 = vpop.eup %1012 }
 0x1ff   :  { %v470_v54 = vsub.f32 %v1315_v28, %v1013_v51 }
 0x201   :  { %v471_v55 = vmul.f32 %v470_v54, %v466_v52 }
 0x203   :  { %v1335_v56 = vadd.f32 %v1013_v51, %v471_v55 }
 0x205   :  { %964 = vmatmul.msk.f32.vlgmr.msra.gmra.mxu1 %vm232_vm2, %v1335_v56  ;;  %965 = vmatmul.msk.f32.vlgmr.msra.gmra.mxu2 %vm232_vm2, %v1335_v56 }
 0x206   :  { %966 = vmatmul.msk.f32.vlgmr.msrb.gmra.mxu3 %vm232_vm2, %v1335_v56  ;;  %688 = vmatpush.msra.mxu1 %v1180_v11 }
 0x207   :  { %727 = vmatpush.msra.mxu2 %v1126_v2  ;;  %747 = vmatpush.msrb.mxu3 %v1156_v7 }
 0x208   :  { %689 = vmatpush.msra.mxu1 %v1198_v14 }
 0x209   :  { %728 = vmatpush.msra.mxu2 %v1140_v4  ;;  %748 = vmatpush.msrb.mxu3 %v1173_v10 }
 0x282   :  { %v493_v6 = vpop.f32.mrf.mxu1 }
 0x283   :  { %v536_v8 = vadd.f32 %v493_v6, %v113_v5 }
 0x285   :  { %v537_v9 = vmul.f32 0.5, %v536_v8 }
 0x287   :  { %1014 = vtanh.f32 %v537_v9  ;;  %v869_v9 = vld [vmem:[%s1493_s11 + $0x8] sm:$0xff] }
 0x288   :  { %v513_v13 = vpop.f32.mrf.mxu2 }
 0x289   :  { %v541_v15 = vadd.f32 %v513_v13, %v162_v12  ;;  %v533_v24 = vpop.f32.mrf.mxu3  ;;  %v868_v12 = vld [vmem:[%s1493_s11] sm:$0xff] }
 0x28a   :  { %v534_v29 = vadd.f32 %v1263_v38, %v533_v24 }
 0x28b   :  { %v542_v16 = vmul.f32 0.5, %v541_v15 }
 0x28d   :  { %v1015_v21 = vpop.eup %1014  ;;  %1016 = vtanh.f32 %v542_v16 }
 0x28e   :  { %v539_v25 = vmul.f32 0.5, %v1015_v21 }
 0x290   :  { %v540_v26 = vadd.f32 0.5, %v539_v25 }
 0x292   :  { %v546_v32 = vmul.f32 %v540_v26, %v534_v29  ;;  %v217_v29 = vadd.f32 %v1268_v39, %v1351_v62 }
 0x293   :  { %v1017_v33 = vpop.eup %1016 }
 0x294   :  { %v547_v20 = vadd.f32 %v546_v32, %v211_v31  ;;  %v544_v34 = vmul.f32 0.5, %v1017_v33 }
 0x296   :  { %1018 = vtanh.f32 %v547_v20  ;;  %v545_v36 = vadd.f32 0.5, %v544_v34 }
 0x29c   :  { %v1019_v35 = vpop.eup %1018 }
 0x29d   :  { %v549_v37 = vsub.f32 %v1335_v56, %v1019_v35 }
 0x29f   :  { %v550_v40 = vmul.f32 %v549_v37, %v545_v36 }
 0x2a1   :  { %v1367_v41 = vadd.f32 %v1019_v35, %v550_v40  ;;  %v122_v40 = vadd.f32 %v1243_v23, %v1232_v18 }
 0x2a3   :  { %967 = vmatmul.msk.f32.vlgmr.msra.gmra.mxu0 %vm232_vm2, %v1367_v41  ;;  %968 = vmatmul.msk.f32.vlgmr.msrb.gmra.mxu1 %vm232_vm2, %v1367_v41 }
 0x2a4   :  { %969 = vmatmul.msk.f32.vlgmr.msrb.gmra.mxu2 %vm232_vm2, %v1367_v41  ;;  %767 = vmatpush.msra.mxu0 %v1180_v11 }
 0x2a5   :  { %806 = vmatpush.msrb.mxu1 %v1126_v2  ;;  %826 = vmatpush.msrb.mxu2 %v1156_v7 }
 0x2a6   :  { %768 = vmatpush.msra.mxu0 %v1198_v14 }
 0x2a7   :  { %807 = vmatpush.msrb.mxu1 %v1140_v4  ;;  %827 = vmatpush.msrb.mxu2 %v1173_v10  ;;  %v214_v10 = vadd.f32 %v1268_v39, %v213_v60  ;;  %v119_v60 = vadd.f32 %v1243_v23, %v1251_v30 }
 0x320   :  { %v572_v43 = vpop.f32.mrf.mxu0  ;;  %v592_v46 = vpop.f32.mrf.mxu1 }
 0x321   :  { %v615_v44 = vadd.f32 %v572_v43, %v116_v42  ;;  %v620_v47 = vadd.f32 %v592_v46, %v165_v17 }
 0x323   :  { %v616_v45 = vmul.f32 0.5, %v615_v44  ;;  %v621_v2 = vmul.f32 0.5, %v620_v47 }
 0x325   :  { %1020 = vtanh.f32 %v616_v45 }
 0x326   :  { %1022 = vtanh.f32 %v621_v2 }
 0x327   :  { %v612_v7 = vpop.f32.mrf.mxu2 }
 0x328   :  { %v613_v4 = vadd.f32 %v1263_v38, %v612_v7 }
 0x32b   :  { %v1021_v48 = vpop.eup %1020 }
 0x32c   :  { %v618_v49 = vmul.f32 0.5, %v1021_v48  ;;  %v1023_v52 = vpop.eup %1022 }
 0x32d   :  { %v623_v54 = vmul.f32 0.5, %v1023_v52 }
 0x32e   :  { %v619_v50 = vadd.f32 0.5, %v618_v49 }
 0x32f   :  { %v624_v57 = vadd.f32 0.5, %v623_v54 }
 0x330   :  { %v625_v51 = vmul.f32 %v619_v50, %v613_v4 }
 0x332   :  { %v626_v22 = vadd.f32 %v625_v51, %v214_v10 }
 0x334   :  { %1024 = vtanh.f32 %v626_v22 }
 0x33a   :  { %v1025_v55 = vpop.eup %1024 }
 0x33b   :  { %v628_v58 = vsub.f32 %v1367_v41, %v1025_v55 }
 0x33d   :  { %v629_v59 = vmul.f32 %v628_v58, %v624_v57 }
 0x33f   :  { %v630_v5 = vadd.f32 %v1025_v55, %v629_v59 }
 0x341   :  { %970 = vmatmul.msk.f32.vlgmr.msra.gmra.mxu3 %vm232_vm2, %v630_v5  ;;  %971 = vmatmul.msk.f32.vlgmr.msrb.gmra.mxu0 %vm232_vm2, %v630_v5 }
 0x342   :  { %972 = vmatmul.msk.f32.vlgmr.msra.gmra.mxu1 %vm232_vm2, %v630_v5  ;;  %846 = vmatpush.msra.mxu3 %v1180_v11  ;;  %v168_v11 = vadd.f32 %v1249_v27, %v1349_v61 }
 0x343   :  { %891 = vmatpush.msrb.mxu0 %v869_v9 }
 0x344   :  { %847 = vmatpush.msra.mxu3 %v1198_v14 }
 0x345   :  { %892 = vmatpush.msrb.mxu0 %v868_v12  ;;  %v125_v12 = vadd.f32 %v1243_v23, %v1234_v19 }
 0x3be   :  { %v671_v13 = vpop.f32.mrf.mxu0 }
 0x3bf   :  { %v699_v14 = vadd.f32 %v671_v13, %v168_v11  ;;  %v691_v21 = vpop.f32.mrf.mxu1 }
 0x3c0   :  { %v692_v25 = vadd.f32 %v1263_v38, %v691_v21 }
 0x3c1   :  { %v700_v30 = vmul.f32 0.5, %v699_v14 }
 0x3c4   :  { %v651_v6 = vpop.f32.mrf.mxu3 }
 0x3c5   :  { %v694_v8 = vadd.f32 %v651_v6, %v119_v60 }
 0x3c7   :  { %v695_v15 = vmul.f32 0.5, %v694_v8 }
 0x3c9   :  { %1026 = vtanh.f32 %v695_v15 }
 0x3ca   :  { %1028 = vtanh.f32 %v700_v30 }
 0x3cf   :  { %v1027_v16 = vpop.eup %1026 }
 0x3d0   :  { %v697_v24 = vmul.f32 0.5, %v1027_v16  ;;  %v1029_v20 = vpop.eup %1028  ;;  %v174_v16 = vadd.f32 %v1249_v27, %v1357_v1 }
 0x3d1   :  { %v702_v33 = vmul.f32 0.5, %v1029_v20 }
 0x3d2   :  { %v698_v26 = vadd.f32 0.5, %v697_v24 }
 0x3d3   :  { %v703_v34 = vadd.f32 0.5, %v702_v33 }
 0x3d4   :  { %v704_v31 = vmul.f32 %v698_v26, %v692_v25 }
 0x3d6   :  { %v705_v32 = vadd.f32 %v704_v31, %v217_v29 }
 0x3d8   :  { %1030 = vtanh.f32 %v705_v32  ;;  %v223_v32 = vadd.f32 %v1268_v39, %v1359_v3 }
 0x3de   :  { %v1031_v61 = vpop.eup %1030 }
 0x3df   :  { %v707_v35 = vsub.f32 %v630_v5, %v1031_v61 }
 0x3e1   :  { %v708_v36 = vmul.f32 %v707_v35, %v703_v34 }
 0x3e3   :  { %v709_v37 = vadd.f32 %v1031_v61, %v708_v36 }
 0x3e5   :  { %973 = vmatmul.msk.f32.vlgmr.msra.gmra.mxu2 %vm232_vm2, %v709_v37  ;;  %974 = vmatmul.msk.f32.vlgmr.msrb.gmra.mxu3 %vm232_vm2, %v709_v37 }
 0x3e6   :  { %975 = vmatmul.msk.f32.vlgmr.msra.gmra.mxu0 %vm232_vm2, %v709_v37 }
 0x3ee   :  { %979 = vmatmul.msk.f32.vlgmr.msrb.gmra.mxu0 %vm232_vm2, %v1284_v53  ;;  %v1423_v53 = vld [vmem:[%s1494_s12] ss:$0 sm:$0xff] }
 0x3f6   :  { %980 = vmatmul.msk.f32.gmra.mxu0 %vm232_vm2, %v1315_v28 }
 0x3fe   :  { %981 = vmatmul.msk.f32.gmra.mxu0 %vm232_vm2, %v1335_v56 }
 0x406   :  { %982 = vmatmul.msk.f32.gmra.mxu0 %vm232_vm2, %v1367_v41  ;;  %v171_v41 = vadd.f32 %v1249_v27, %v1353_v63  ;;  %v220_v63 = vadd.f32 %v1268_v39, %v1355_v0 }
 0x40e   :  { %983 = vmatmul.msk.f32.gmra.mxu0 %vm232_vm2, %v630_v5 }
 0x416   :  { %984 = vmatmul.msk.f32.gmra.mxu0 %vm232_vm2, %v709_v37 }
 0x463   :  { %v770_v62 = vpop.f32.mrf.mxu0 }
 0x464   :  { %v771_v7 = vadd.f32 %v1263_v38, %v770_v62 }
 0x468   :  { %v730_v42 = vpop.f32.mrf.mxu2  ;;  %v750_v56 = vpop.f32.mrf.mxu3 }
 0x469   :  { %v773_v28 = vadd.f32 %v730_v42, %v122_v40  ;;  %v778_v46 = vadd.f32 %v750_v56, %v171_v41 }
 0x46b   :  { %v774_v43 = vmul.f32 0.5, %v773_v28  ;;  %v894_v44 = vpop.f32.mrf.mxu0  ;;  %v779_v18 = vmul.f32 0.5, %v778_v46 }
 0x46c   :  { %v895_v45 = vadd.f32 %v1423_v53, %v894_v44 }
 0x46d   :  { %1032 = vtanh.f32 %v774_v43 }
 0x46e   :  { %919 = vst.msk [vmem:[%s1495_s13] sm:$0xff] %vm918_vm3, %v895_v45  ;;  %1034 = vtanh.f32 %v779_v18 }
 0x473   :  { %v1033_v17 = vpop.eup %1032  ;;  %v897_v47 = vpop.f32.mrf.mxu0 }
 0x474   :  { %v776_v2 = vmul.f32 0.5, %v1033_v17  ;;  %v898_v48 = vadd.f32 %v1423_v53, %v897_v47  ;;  %v1035_v51 = vpop.eup %1034 }
 0x475   :  { %v781_v52 = vmul.f32 0.5, %v1035_v51 }
 0x476   :  { %v777_v49 = vadd.f32 0.5, %v776_v2  ;;  %920 = vst.msk [vmem:[%s1495_s13 + $0x8] sm:$0xff] %vm918_vm3, %v898_v48 }
 0x477   :  { %v782_v55 = vadd.f32 0.5, %v781_v52 }
 0x478   :  { %v783_v50 = vmul.f32 %v777_v49, %v771_v7 }
 0x47a   :  { %v784_v4 = vadd.f32 %v783_v50, %v220_v63 }
 0x47b   :  { %v900_v10 = vpop.f32.mrf.mxu0 }
 0x47c   :  { %1036 = vtanh.f32 %v784_v4  ;;  %v901_v22 = vadd.f32 %v1423_v53, %v900_v10 }
 0x47e   :  { %921 = vst.msk [vmem:[%s1495_s13 + $0x10] sm:$0xff] %vm918_vm3, %v901_v22 }
 0x482   :  { %v1037_v54 = vpop.eup %1036 }
 0x483   :  { %v786_v57 = vsub.f32 %v709_v37, %v1037_v54  ;;  %v903_v58 = vpop.f32.mrf.mxu0 }
 0x484   :  { %v904_v59 = vadd.f32 %v1423_v53, %v903_v58 }
 0x485   :  { %v787_v0 = vmul.f32 %v786_v57, %v782_v55 }
 0x486   :  { %922 = vst.msk [vmem:[%s1495_s13 + $0x18] sm:$0xff] %vm918_vm3, %v904_v59 }
 0x487   :  { %v788_v5 = vadd.f32 %v1037_v54, %v787_v0 }
 0x489   :  { %976 = vmatmul.msk.f32.vlgmr.msrb.gmra.mxu1 %vm232_vm2, %v788_v5  ;;  %977 = vmatmul.msk.f32.vlgmr.msrb.gmra.mxu2 %vm232_vm2, %v788_v5 }
 0x48a   :  { %978 = vmatmul.msk.f32.vlgmr.msra.gmra.mxu3 %vm232_vm2, %v788_v5  ;;  %985 = vmatmul.msk.f32.gmra.mxu0 %vm232_vm2, %v788_v5 }
 0x48b   :  { %v906_v60 = vpop.f32.mrf.mxu0 }
 0x48c   :  { %v907_v6 = vadd.f32 %v1423_v53, %v906_v60 }
 0x48e   :  { %923 = vst.msk [vmem:[%s1495_s13 + $0x20] sm:$0xff] %vm918_vm3, %v907_v6 }
 0x493   :  { %v909_v8 = vpop.f32.mrf.mxu0 }
 0x494   :  { %v910_v9 = vadd.f32 %v1423_v53, %v909_v8 }
 0x496   :  { %924 = vst.msk [vmem:[%s1495_s13 + $0x28] sm:$0xff] %vm918_vm3, %v910_v9 }
 0x506   :  { %v809_v13 = vpop.f32.mrf.mxu1 }
 0x507   :  { %v852_v15 = vadd.f32 %v809_v13, %v125_v12  ;;  %v912_v11 = vpop.f32.mrf.mxu0 }
 0x508   :  { %v913_v14 = vadd.f32 %v1423_v53, %v912_v11 }
 0x509   :  { %v853_v30 = vmul.f32 0.5, %v852_v15 }
 0x50a   :  { %925 = vst.msk [vmem:[%s1495_s13 + $0x30] sm:$0xff] %vm918_vm3, %v913_v14 }
 0x50b   :  { %1038 = vtanh.f32 %v853_v30 }
 0x50c   :  { %v829_v21 = vpop.f32.mrf.mxu2 }
 0x50d   :  { %v857_v24 = vadd.f32 %v829_v21, %v174_v16  ;;  %v849_v19 = vpop.f32.mrf.mxu3 }
 0x50e   :  { %v850_v31 = vadd.f32 %v1263_v38, %v849_v19 }
 0x50f   :  { %v858_v25 = vmul.f32 0.5, %v857_v24 }
 0x511   :  { %v1039_v26 = vpop.eup %1038  ;;  %1040 = vtanh.f32 %v858_v25 }
 0x512   :  { %v855_v23 = vmul.f32 0.5, %v1039_v26 }
 0x514   :  { %v856_v29 = vadd.f32 0.5, %v855_v23 }
 0x516   :  { %v862_v20 = vmul.f32 %v856_v29, %v850_v31 }
 0x517   :  { %v1041_v61 = vpop.eup %1040 }
 0x518   :  { %v863_v33 = vadd.f32 %v862_v20, %v223_v32  ;;  %v860_v34 = vmul.f32 0.5, %v1041_v61 }
 0x51a   :  { %1042 = vtanh.f32 %v863_v33  ;;  %v861_v1 = vadd.f32 0.5, %v860_v34 }
 0x520   :  { %v1043_v27 = vpop.eup %1042 }
 0x521   :  { %v865_v35 = vsub.f32 %v788_v5, %v1043_v27 }
 0x523   :  { %v866_v36 = vmul.f32 %v865_v35, %v861_v1 }
 0x525   :  { %v867_v37 = vadd.f32 %v1043_v27, %v866_v36 }
 0x527   :  { %986 = vmatmul.msk.f32.gmra.mxu0 %vm232_vm2, %v867_v37 }
 0x5a4   :  { %v915_v62 = vpop.f32.mrf.mxu0 }
 0x5a5   :  { %v916_v40 = vadd.f32 %v1423_v53, %v915_v62 }
 0x5a7   :  { %926 = vst.msk [vmem:[%s1495_s13 + $0x38] sm:$0xff] %vm918_vm3, %v916_v40 }

</bundles_post_ra>
